<compile_context>
chip_gen: v5e
topology: v5e:2x2
jax: 0.10.0
libtpu: 0.0.40
codegen_flags: <defaults>
</compile_context>

<pallas_src>
import jax
import jax.numpy as jnp
import numpy as np
from jax.experimental import pallas as pl
from jax.experimental.pallas import tpu as pltpu


def attn_kernel(hproj_ref, enc_ref, we_ref, v_ref, out_ref):
    # hproj_ref: [BB, 1, H] f32   (hidden @ Wh.T + b, precomputed outside)
    # enc_ref:   [BB, T, H]       (f32 or bf16)
    # we_ref:    [H_out, H_in]    (f32 or bf16)
    # v_ref:     [1, H] f32
    # out_ref:   [BB, H]
    bb, t, h = enc_ref.shape
    enc = enc_ref[...]                                  # [BB, T, H]

    # Encoder projection on the MXU as one big matmul: collapse (BB, T) -> rows.
    enc2d = enc.reshape(bb * t, h)                      # [BB*T, H]
    epart = jax.lax.dot_general(
        enc2d, we_ref[...],
        dimension_numbers=(((1,), (1,)), ((), ())),     # contract feature dims, no transpose
        preferred_element_type=jnp.float32,
    ).reshape(bb, t, h)                                 # [BB, T, H] f32

    # energy = tanh(hid-part + enc-part); hproj broadcasts over T.
    energy = jnp.tanh(epart + hproj_ref[...])           # [BB, T, H] f32

    # scores = energy . v  -> lane reduce (VPU/XLU), keeps the MXU free.
    scores = jnp.sum(energy * v_ref[...], axis=-1, keepdims=True)   # [BB, T, 1]

    # softmax over T (the only attention axis), numerically stable in f32.
    m = jnp.max(scores, axis=1, keepdims=True)
    p = jnp.exp(scores - m)
    w = p / jnp.sum(p, axis=1, keepdims=True)           # [BB, T, 1]

    # context = sum_t w[b,t] * enc[b,t,:]  -> [BB, H], lane-dense 2D store.
    ctx = jnp.sum(w * enc.astype(jnp.float32), axis=1)
    out_ref[...] = ctx.astype(out_ref.dtype)
    # TODO(synk): optional boolean mask (masked_fill_ with -1e20 before softmax)
    # is not plumbed through; this implements the mask=None path.


def _vmem_budget_bytes():
    """Per-generation VMEM budget (v7x has 64 MiB/TC, v5e/v6e 128 MiB)."""
    cap = 64 * 1024 * 1024
    try:
        info = pltpu.get_tpu_info()
        cap = int(getattr(info, "vmem_capacity_bytes", cap)) or cap
    except Exception:
        pass
    # Leave headroom for Mosaic scratch / pipeline slack.
    return cap // 2


def _choose_batch_block(B, T, H, enc_itemsize, out_itemsize, budget_bytes):
    """Largest BB whose double-buffered tiles fit the budget (multiple of 8 if < B)."""
    per_row = 2 * (T * H * enc_itemsize + H * 4 + H * out_itemsize)  # enc + hproj(f32) + out
    bb = max(1, budget_bytes // max(per_row, 1))
    bb = int(min(bb, 1024))
    if bb >= B:
        return B
    return max(8, (bb // 8) * 8)  # keep the 2D output block (BB, H) 8-aligned


def attn_forward(hidden, encoder_outputs, w_attn, b_attn, v_w, *, use_bf16=False):
    """hidden: [n_layer=1, B, H]; encoder_outputs: [B, T, H]; returns [B, 1, H]."""
    B, T, H = encoder_outputs.shape
    out_dtype = encoder_outputs.dtype

    # ---- hoisted hidden projection (single batched matmul, includes bias) ----
    hid2d = hidden[0].astype(jnp.float32)                        # [B, H]  (n_layer = 1)
    wh = w_attn[:, :H].astype(jnp.float32)                       # [H_out, H_in]
    hproj = jax.lax.dot_general(
        hid2d, wh, dimension_numbers=(((1,), (1,)), ((), ()))
    ) + b_attn.astype(jnp.float32)                               # [B, H]
    hproj = hproj.reshape(B, 1, H)

    we = w_attn[:, H:]                                           # [H_out, H_in]
    v = v_w.reshape(1, H).astype(jnp.float32)

    enc = encoder_outputs
    if use_bf16:
        enc = enc.astype(jnp.bfloat16)
        we = we.astype(jnp.bfloat16)

    # ---- batch blocking under the per-generation VMEM budget ----
    vmem_limit = _vmem_budget_bytes()
    bb = _choose_batch_block(B, T, H, enc.dtype.itemsize, jnp.dtype(out_dtype).itemsize,
                             vmem_limit // 2)
    Bp = ((B + bb - 1) // bb) * bb
    if Bp != B:
        pad = Bp - B
        enc = jnp.pad(enc, ((0, pad), (0, 0), (0, 0)))
        hproj = jnp.pad(hproj, ((0, pad), (0, 0), (0, 0)))

    grid_spec = pltpu.PrefetchScalarGridSpec(
        num_scalar_prefetch=0,
        grid=(Bp // bb,),
        in_specs=[
            pl.BlockSpec((bb, 1, H), lambda i: (i, 0, 0)),   # hidden projection
            pl.BlockSpec((bb, T, H), lambda i: (i, 0, 0)),   # encoder outputs
            pl.BlockSpec((H, H), lambda i: (0, 0)),          # We ([out, in])
            pl.BlockSpec((1, H), lambda i: (0, 0)),          # v
        ],
        out_specs=pl.BlockSpec((bb, H), lambda i: (i, 0)),   # lane-dense 2D output
    )

    out2d = pl.pallas_call(
        attn_kernel,
        out_shape=jax.ShapeDtypeStruct((Bp, H), out_dtype),
        grid_spec=grid_spec,
        compiler_params=pltpu.CompilerParams(
            dimension_semantics=("parallel",),               # batches independent -> megacore
            vmem_limit_bytes=vmem_limit,
        ),
    )(hproj, enc, we, v)

    return out2d[:B].reshape(B, 1, H)


def attn_reference(hidden, encoder_outputs, w_attn, b_attn, v_w):
    """Pure-JAX reference mirroring the PyTorch forward (mask=None)."""
    B, T, H = encoder_outputs.shape
    H_rep = jnp.broadcast_to(jnp.transpose(hidden, (1, 0, 2)), (B, T, H))
    cat = jnp.concatenate([H_rep, encoder_outputs], axis=2)        # [B, T, 2H]
    energy = jnp.tanh(cat @ w_attn.T + b_attn)                     # [B, T, H]
    scores = (energy @ v_w.reshape(H, 1)).transpose(0, 2, 1)       # [B, 1, T]
    weights = jax.nn.softmax(scores, axis=2)                       # [B, 1, T]
    return jnp.einsum("bqt,bth->bqh", weights, encoder_outputs)    # [B, 1, H]


if __name__ == "__main__":
    B, T, H = 2, 8, 32
    key = jax.random.PRNGKey(0)
    k1, k2, k3, k4, k5 = jax.random.split(key, 5)

    hidden = jax.random.normal(k1, (1, B, H), dtype=jnp.float32)           # [n_layer=1, B, H]
    encoder_outputs = jax.random.normal(k2, (B, T, H), dtype=jnp.float32)  # [B, T, H]

    # Deterministic parameter init (Linear(2H -> H) with bias, Linear(H -> 1) no bias).
    bound1 = 1.0 / np.sqrt(2 * H)
    w_attn = jax.random.uniform(k3, (H, 2 * H), jnp.float32, -bound1, bound1)
    b_attn = jax.random.uniform(k4, (H,), jnp.float32, -bound1, bound1)
    bound2 = 1.0 / np.sqrt(H)
    v_w = jax.random.uniform(k5, (1, H), jnp.float32, -bound2, bound2)

    ref = attn_reference(hidden, encoder_outputs, w_attn, b_attn, v_w)

    # f32 path: exact match with the reference.
    out = attn_forward(hidden, encoder_outputs, w_attn, b_attn, v_w)
    out = jax.block_until_ready(out)
    np.testing.assert_allclose(np.asarray(out), np.asarray(ref), rtol=1e-5, atol=1e-5)

    # bf16 streaming path (halves enc HBM traffic / 2x MXU throughput on v6e/v7x).
    out_bf16 = attn_forward(hidden, encoder_outputs, w_attn, b_attn, v_w, use_bf16=True)
    out_bf16 = jax.block_until_ready(out_bf16)
    np.testing.assert_allclose(np.asarray(out_bf16), np.asarray(ref), rtol=0, atol=5e-2)

    print("KERNEL_OK")
</pallas_src>

<mosaic_0001>
module attributes {stable_mosaic.version = 11 : i64} {
  func.func @attn_kernel(%arg0: i32, %arg1: memref<2x1x32xf32, #tpu.memory_space<vmem>>, %arg2: memref<2x8x32xf32, #tpu.memory_space<vmem>>, %arg3: memref<32x32xf32, #tpu.memory_space<vmem>>, %arg4: memref<1x32xf32, #tpu.memory_space<vmem>>, %arg5: memref<2x32xf32, #tpu.memory_space<vmem>>) attributes {dimension_semantics = [#tpu.dimension_semantics<parallel>], iteration_bounds = array<i64: 1>, scalar_prefetch = 0 : i64, scratch_operands = 0 : i64, tpu.core_type = #tpu.core_type<tc>, window_params = [{transform_indices = @transform_0, window_bounds = array<i64: 2, 1, 32>}, {transform_indices = @transform_1, window_bounds = array<i64: 2, 8, 32>}, {pipeline_mode = #tpu.pipeline_mode<synchronous>, transform_indices = @transform_2, window_bounds = array<i64: 32, 32>}, {pipeline_mode = #tpu.pipeline_mode<synchronous>, transform_indices = @transform_3, window_bounds = array<i64: 1, 32>}, {transform_indices = @transform_4, window_bounds = array<i64: 2, 32>}]} {
    %c0 = arith.constant 0 : index
    %c0_0 = arith.constant 0 : index
    %c0_1 = arith.constant 0 : index
    %0 = vector.load %arg2[%c0, %c0_0, %c0_1] : memref<2x8x32xf32, #tpu.memory_space<vmem>>, vector<2x8x32xf32>
    %1 = vector.shape_cast %0 : vector<2x8x32xf32> to vector<16x32xf32>
    %c0_2 = arith.constant 0 : index
    %c0_3 = arith.constant 0 : index
    %2 = vector.load %arg3[%c0_2, %c0_3] : memref<32x32xf32, #tpu.memory_space<vmem>>, vector<32x32xf32>
    %cst = arith.constant dense<0.000000e+00> : vector<16x32xf32>
    %3 = tpu.matmul %1, %2, %cst {dimension_numbers = #tpu.dot_dimension_numbers<[1], [1], [0], [0], [0, 0, 1, 0], [], []>} : vector<16x32xf32>, vector<32x32xf32>, vector<16x32xf32> -> vector<16x32xf32>
    %4 = vector.shape_cast %3 : vector<16x32xf32> to vector<2x8x32xf32>
    %c0_4 = arith.constant 0 : index
    %c0_5 = arith.constant 0 : index
    %c0_6 = arith.constant 0 : index
    %5 = vector.load %arg1[%c0_4, %c0_5, %c0_6] : memref<2x1x32xf32, #tpu.memory_space<vmem>>, vector<2x1x32xf32>
    %6 = vector.broadcast %5 : vector<2x1x32xf32> to vector<2x8x32xf32>
    %7 = arith.addf %4, %6 : vector<2x8x32xf32>
    %8 = math.tanh %7 : vector<2x8x32xf32>
    %c0_7 = arith.constant 0 : index
    %c0_8 = arith.constant 0 : index
    %9 = vector.load %arg4[%c0_7, %c0_8] : memref<1x32xf32, #tpu.memory_space<vmem>>, vector<1x32xf32>
    %10 = vector.shape_cast %9 : vector<1x32xf32> to vector<1x1x32xf32>
    %11 = vector.broadcast %10 : vector<1x1x32xf32> to vector<2x8x32xf32>
    %12 = arith.mulf %8, %11 : vector<2x8x32xf32>
    %cst_9 = arith.constant dense<0.000000e+00> : vector<2x8xf32>
    %13 = vector.multi_reduction <add>, %12, %cst_9 [2] : vector<2x8x32xf32> to vector<2x8xf32>
    %14 = vector.shape_cast %13 : vector<2x8xf32> to vector<2x8x1xf32>
    %cst_10 = arith.constant dense<0xFF800000> : vector<2x1xf32>
    %15 = vector.multi_reduction <maximumf>, %14, %cst_10 [1] : vector<2x8x1xf32> to vector<2x1xf32>
    %16 = vector.shape_cast %15 : vector<2x1xf32> to vector<2x1x1xf32>
    %17 = vector.broadcast %16 : vector<2x1x1xf32> to vector<2x8x1xf32>
    %18 = arith.subf %14, %17 : vector<2x8x1xf32>
    %19 = math.exp %18 : vector<2x8x1xf32>
    %cst_11 = arith.constant dense<0.000000e+00> : vector<2x1xf32>
    %20 = vector.multi_reduction <add>, %19, %cst_11 [1] : vector<2x8x1xf32> to vector<2x1xf32>
    %21 = vector.shape_cast %20 : vector<2x1xf32> to vector<2x1x1xf32>
    %22 = vector.broadcast %21 : vector<2x1x1xf32> to vector<2x8x1xf32>
    %23 = arith.divf %19, %22 : vector<2x8x1xf32>
    %24 = vector.broadcast %23 : vector<2x8x1xf32> to vector<2x8x32xf32>
    %25 = arith.mulf %24, %0 : vector<2x8x32xf32>
    %cst_12 = arith.constant dense<0.000000e+00> : vector<2x32xf32>
    %26 = vector.multi_reduction <add>, %25, %cst_12 [1] : vector<2x8x32xf32> to vector<2x32xf32>
    %c0_13 = arith.constant 0 : index
    %c0_14 = arith.constant 0 : index
    %27 = vector.load %arg5[%c0_13, %c0_14] : memref<2x32xf32, #tpu.memory_space<vmem>>, vector<2x32xf32>
    tpu.vector_store %arg5[%c0_13, %c0_14], %26 {strides = array<i32>} : memref<2x32xf32, #tpu.memory_space<vmem>>, vector<2x32xf32>,
    return
  }
  func.func @transform_0(%arg0: i32) -> (i32, i32, i32) {
    %c0_i32 = arith.constant 0 : i32
    %c0_i32_0 = arith.constant 0 : i32
    %c0_i32_1 = arith.constant 0 : i32
    return %arg0, %c0_i32, %c0_i32_0 : i32, i32, i32
  }
  func.func @transform_1(%arg0: i32) -> (i32, i32, i32) {
    %c0_i32 = arith.constant 0 : i32
    %c0_i32_0 = arith.constant 0 : i32
    %c0_i32_1 = arith.constant 0 : i32
    return %arg0, %c0_i32, %c0_i32_0 : i32, i32, i32
  }
  func.func @transform_2(%arg0: i32) -> (i32, i32) {
    %c0_i32 = arith.constant 0 : i32
    %c0_i32_0 = arith.constant 0 : i32
    %c0_i32_1 = arith.constant 0 : i32
    return %c0_i32, %c0_i32_0 : i32, i32
  }
  func.func @transform_3(%arg0: i32) -> (i32, i32) {
    %c0_i32 = arith.constant 0 : i32
    %c0_i32_0 = arith.constant 0 : i32
    %c0_i32_1 = arith.constant 0 : i32
    return %c0_i32, %c0_i32_0 : i32, i32
  }
  func.func @transform_4(%arg0: i32) -> (i32, i32) {
    %c0_i32 = arith.constant 0 : i32
    %c0_i32_0 = arith.constant 0 : i32
    return %arg0, %c0_i32 : i32, i32
  }
}

</mosaic_0001>

<bundles_post_ra>
// kernel: tpu_custom_call.1
= control target key start
LH: loop header
LB: loop body
LE: loop exit
PB: predicated region body
PF: predicated region fallthrough
CT: control target
= control target key end

     0   :  { %9 = vsyncpa [#allocation3], 0  ;;  %s443_s0 = inlined_call_operand.hbm [shape: f32[2,1,32], index: 0, kind: input, shape index: {}]   ;;  %s444_s1 = inlined_call_operand.hbm [shape: f32[2,8,32], index: 1, kind: input, shape index: {}]   ;;  %s445_s2 = inlined_call_operand.hbm [shape: f32[32,32], index: 2, kind: input, shape index: {}]   ;;  %s446_s3 = inlined_call_operand.vmem [shape: f32[1,32], index: 3, kind: input, shape index: {}]   ;;  %s447_s4 = inlined_call_operand.hbm [shape: f32[2,32], index: 4, kind: output, shape index: {}]  }
   0x1   :  { %10 = vsyncpa [#allocation6], 0  ;;  %s29_s17 = sshll.u32 %s444_s1, 4  ;;  %s30_s17 = int_to_ptr.hbm [resolvable:$true] %s29_s17 }
   0x2   :  { %11 = vsyncpa [#allocation4], 0  ;;  %s373_s18 = smov [#allocation5]   ;;  %s16_s22 = sshll.u32 %s443_s0, 4  ;;  %s17_s22 = int_to_ptr.hbm [resolvable:$true] %s16_s22 }
   0x3   :  { %s31_s19 = sshll.u32 %s373_s18, 4  ;;  %s374_s23 = smov 128   ;;  %s32_s19 = int_to_ptr.vmem [resolvable:$true] %s31_s19 }
   0x4   :  { %s375_s24 = smov 8   ;;  %s376_s25 = smov [#allocation2]  }
   0x5   :  { %37 = dma.hbm_to_vmem [thread:$0]  %s30_s17, 256, %s32_s19, [#allocation6], %s374_s23, %s374_s23, %s375_s24  }
   0x6   :  { %s18_s26 = sshll.u32 %s376_s25, 4  ;;  %s377_s27 = smov 16   ;;  %s19_s26 = int_to_ptr.vmem [resolvable:$true] %s18_s26 }
   0x7   :  { %s378_s28 = smov 1   ;;  %s42_s30 = sshll.u32 %s445_s2, 4  ;;  %s43_s30 = int_to_ptr.hbm [resolvable:$true] %s42_s30 }
   0x8   :  { %24 = dma.hbm_to_vmem [thread:$0]  %s17_s22, 32, %s19_s26, [#allocation3], %s377_s27, %s377_s27, %s378_s28  }
   0x9   :  { %s379_s5 = smov [#allocation7]  }
   0xa   :  { %s44_s6 = sshll.u32 %s379_s5, 4  ;;  %s45_s6 = int_to_ptr.vmem [resolvable:$true] %s44_s6 }
   0xb   :  { %50 = dma.hbm_to_vmem [thread:$0]  %s43_s30, 512, %s45_s6, [#allocation6], %s374_s23, %s374_s23, %s375_s24  }
   0xc   :  { %367 = dma.done.wait [#allocation3], 32  }
   0xd   :  { %368 = vsyncadd [#allocation3], 4294967264 }
   0xe   :  { %369 = dma.done.wait [#allocation6], 768  }
   0xf   :  { %370 = vsyncadd [#allocation6], 4294966528  ;;  %vm71_vm0 = vcmask 261120   ;;  %v70_v0 = vld [vmem:[#allocation7 + $0x18] sm:$0xff]  ;;  %v69_v1 = vld [vmem:[#allocation7 + $0x10] sm:$0xff]  ;;  %s227_s10 = sshll.u32 %s447_s4, 4  ;;  %s228_s10 = int_to_ptr.hbm [resolvable:$true] %s227_s10 }
  0x10   :  { %238 = vmatpush.xpose.msk.msra.mxu0 %vm71_vm0, %v70_v0  ;;  %244 = vmatpush.xpose.msk.msra.mxu1 %vm71_vm0, %v70_v0  ;;  %v68_v2 = vld [vmem:[#allocation7 + $0x8] sm:$0xff]  ;;  %v67_v3 = vld [vmem:[#allocation7] sm:$0xff]  ;;  %v422_v4 = vld [vmem:[#allocation5] sm:$0xff]  ;;  %vm215_vm9 = vcmask 1041409   ;;  %vm218_vm10 = vcmask 254976  }
  0x11   :  { %v425_v5 = vld [vmem:[#allocation5 + $0x8] sm:$0xff]  ;;  %v256_v6 = vld [vmem:[#allocation2] ss:$0 sm:$0xff]  ;;  %v257_v7 = vld [vmem:[#allocation2 + $0x1] ss:$0 sm:$0xff] }
  0x12   :  { %v258_v12 = vld [vmem:[%s446_s3] ss:$0 sm:$0xff]  ;;  %s380_s3 = smov [#allocation8]  }
  0x13   :  { %s225_s7 = sshll.u32 %s380_s3, 4  ;;  %s226_s7 = int_to_ptr.vmem [resolvable:$true] %s225_s7 }
  0x14   :  { %239 = vmatpush.xpose.msk.msra.mxu0 %vm71_vm0, %v69_v1  ;;  %245 = vmatpush.xpose.msk.msra.mxu1 %vm71_vm0, %v69_v1 }
  0x18   :  { %240 = vmatpush.xpose.msk.msra.mxu0 %vm71_vm0, %v68_v2  ;;  %246 = vmatpush.xpose.msk.msra.mxu1 %vm71_vm0, %v68_v2 }
  0x1c   :  { %241 = vmatpush.xpose.msk.msra.mxu0 %vm71_vm0, %v67_v3  ;;  %247 = vmatpush.xpose.msk.msra.mxu1 %vm71_vm0, %v67_v3 }
  0x1f   :  { %242 = vmatmul.msk.f32.vlgmr.msra.gmra.mxu0 %vm71_vm0, %v422_v4  ;;  %243 = vmatmul.msk.f32.vlgmr.msra.gmra.mxu1 %vm71_vm0, %v425_v5 }
  0x9c   :  { %v107_v8 = vpop.f32.mrf.mxu0  ;;  %v110_v9 = vpop.f32.mrf.mxu1 }
  0x9d   :  { %v121_v10 = vadd.f32 %v256_v6, %v107_v8  ;;  %v122_v11 = vadd.f32 %v257_v7, %v110_v9 }
  0x9f   :  { %259 = vtanh.f32 %v121_v10 }
  0xa0   :  { %261 = vtanh.f32 %v122_v11 }
  0xa5   :  { %v260_v13 = vpop.eup %259 }
  0xa6   :  { %v129_v14 = vmul.f32 %v260_v13, %v258_v12  ;;  %v262_v15 = vpop.eup %261 }
  0xa7   :  { %v130_v17 = vmul.f32 %v262_v15, %v258_v12 }
  0xa8   :  { %v131_v16 = vsel %vm71_vm0, %v129_v14, 0.0 }
  0xa9   :  { %132 = vadd.xlane.f32.xlu0 %v131_v16  ;;  %v134_v18 = vsel %vm71_vm0, %v130_v17, 0.0 }
  0xb1   :  { %135 = vadd.xlane.f32.xlu0 %v134_v18 }
 0x11c   :  { %v133_v19 = vpop.xlane.xlu0 %132 }
 0x11d   :  { %v137_v20 = vrot.slane %v133_v19, 4 }
 0x11f   :  { %v138_v21 = vmax.f32 %v133_v19, %v137_v20 }
 0x121   :  { %v139_v22 = vrot.slane %v138_v21, 2 }
 0x123   :  { %v140_v23 = vmax.f32 %v138_v21, %v139_v22 }
 0x124   :  { %v136_v24 = vpop.xlane.xlu0 %135 }
 0x125   :  { %v141_v25 = vrot.slane %v140_v23, 1  ;;  %v143_v26 = vrot.slane %v136_v24, 4 }
 0x127   :  { %v142_v27 = vmax.f32 %v140_v23, %v141_v25  ;;  %v144_v28 = vmax.f32 %v136_v24, %v143_v26 }
 0x129   :  { %v149_v29 = vsub.f32 %v133_v19, %v142_v27  ;;  %v145_v30 = vrot.slane %v144_v28, 2 }
 0x12b   :  { %v151_v31 = vmul.f32 1.442695, %v149_v29  ;;  %v146_v32 = vmax.f32 %v144_v28, %v145_v30 }
 0x12d   :  { %263 = vpow2.f32 %v151_v31  ;;  %v147_v33 = vrot.slane %v146_v32, 1 }
 0x12f   :  { %v148_v34 = vmax.f32 %v146_v32, %v147_v33 }
 0x131   :  { %v150_v35 = vsub.f32 %v136_v24, %v148_v34 }
 0x133   :  { %v264_v36 = vpop.eup %263  ;;  %v153_v37 = vmul.f32 1.442695, %v150_v35 }
 0x134   :  { %v155_v38 = vrot.slane %v264_v36, 4 }
 0x135   :  { %265 = vpow2.f32 %v153_v37 }
 0x136   :  { %v156_v39 = vadd.f32 %v264_v36, %v155_v38 }
 0x138   :  { %v157_v40 = vrot.slane %v156_v39, 2 }
 0x13a   :  { %v158_v41 = vadd.f32 %v157_v40, %v156_v39 }
 0x13b   :  { %v266_v42 = vpop.eup %265 }
 0x13c   :  { %v159_v43 = vrot.slane %v158_v41, 1  ;;  %v161_v44 = vrot.slane %v266_v42, 4 }
 0x13e   :  { %v160_v45 = vadd.f32 %v159_v43, %v158_v41  ;;  %v162_v46 = vadd.f32 %v266_v42, %v161_v44 }
 0x140   :  { %267 = vrcp.f32 %v160_v45  ;;  %v163_v47 = vrot.slane %v162_v46, 2  ;;  %v178_v54 = vand.u32 2147483648, %v160_v45  ;;  %v176_v56 = vand.u32 2147483647, %v160_v45 }
 0x141   :  { %vm172_vm2 = vweird.f32 %v160_v45 }
 0x142   :  { %v164_v48 = vadd.f32 %v163_v47, %v162_v46  ;;  %v179_v59 = vor.u32 1.1754944e-38, %v178_v54  ;;  %vm177_vm4 = vcmp.eq.f32.partialorder %v176_v56, 8.507059e+37 }
 0x144   :  { %v165_v49 = vrot.slane %v164_v48, 1 }
 0x146   :  { %v268_v50 = vpop.eup %267  ;;  %v166_v51 = vadd.f32 %v165_v49, %v164_v48 }
 0x147   :  { %v168_v52 = vmul.f32 %v268_v50, %v160_v45  ;;  %vm173_vm1 = vweird.f32 %v268_v50 }
 0x148   :  { %269 = vrcp.f32 %v166_v51  ;;  %vm174_vm3 = vmor %vm172_vm2, %vm173_vm1  ;;  %v193_v1 = vand.u32 2147483648, %v166_v51  ;;  %v191_v3 = vand.u32 2147483647, %v166_v51  ;;  %vm187_vm6 = vweird.f32 %v166_v51 }
 0x149   :  { %v169_v53 = vsub.f32 1.0, %v168_v52 }
 0x14a   :  { %v194_v9 = vor.u32 1.1754944e-38, %v193_v1  ;;  %vm192_vm8 = vcmp.eq.f32.partialorder %v191_v3, 8.507059e+37 }
 0x14b   :  { %v170_v55 = vmul.f32 %v268_v50, %v169_v53 }
 0x14d   :  { %v171_v57 = vadd.f32 %v268_v50, %v170_v55 }
 0x14e   :  { %v270_v58 = vpop.eup %269 }
 0x14f   :  { %v183_v60 = vmul.f32 %v270_v58, %v166_v51  ;;  %v175_v61 = vsel %vm174_vm3, %v268_v50, %v171_v57  ;;  %vm188_vm5 = vweird.f32 %v270_v58 }
 0x150   :  { %v180_v62 = vsel %vm177_vm4, %v179_v59, %v175_v61  ;;  %vm189_vm7 = vmor %vm187_vm6, %vm188_vm5 }
 0x151   :  { %v184_v63 = vsub.f32 1.0, %v183_v60  ;;  %v181_v0 = vmul.f32 %v264_v36, %v180_v62 }
 0x153   :  { %v185_v2 = vmul.f32 %v270_v58, %v184_v63  ;;  %v197_v6 = vmul.f32 %v181_v0, %v422_v4 }
 0x155   :  { %v186_v7 = vadd.f32 %v270_v58, %v185_v2  ;;  %v199_v8 = vsel %vm71_vm0, %v197_v6, 0.0 }
 0x156   :  { %v200_v10 = vrot.slane %v199_v8, 4 }
 0x157   :  { %v190_v11 = vsel %vm189_vm7, %v270_v58, %v186_v7 }
 0x158   :  { %v195_v12 = vsel %vm192_vm8, %v194_v9, %v190_v11  ;;  %v201_v13 = vadd.f32 %v200_v10, %v199_v8 }
 0x159   :  { %v196_v14 = vmul.f32 %v266_v42, %v195_v12 }
 0x15a   :  { %v202_v16 = vrot.slane %v201_v13, 2 }
 0x15b   :  { %v198_v15 = vmul.f32 %v196_v14, %v425_v5 }
 0x15c   :  { %v203_v19 = vadd.f32 %v202_v16, %v201_v13 }
 0x15d   :  { %v206_v17 = vsel %vm71_vm0, %v198_v15, 0.0 }
 0x15e   :  { %v207_v18 = vrot.slane %v206_v17, 4  ;;  %v204_v21 = vrot.slane %v203_v19, 1 }
 0x160   :  { %v208_v4 = vadd.f32 %v207_v18, %v206_v17  ;;  %v205_v24 = vadd.f32 %v204_v21, %v203_v19 }
 0x162   :  { %v209_v20 = vrot.slane %v208_v4, 2 }
 0x164   :  { %v210_v22 = vadd.f32 %v209_v20, %v208_v4 }
 0x166   :  { %v211_v23 = vrot.slane %v210_v22, 1 }
 0x168   :  { %v212_v25 = vadd.f32 %v211_v23, %v210_v22 }
 0x16a   :  { %v216_v5 = vsel %vm215_vm9, %v212_v25, %v205_v24 }
 0x16b   :  { %219 = vst.msk [vmem:[#allocation8] sm:$0x3] %vm218_vm10, %v216_v5 }
 0x16c   :  { %230 = dma.vmem_to_hbm [thread:$0]  %s226_s7, 32, %s228_s10, [#allocation4]  }
 0x16d   :  { %371 = dma.done.wait [#allocation4], 32  }
 0x16e   :  { %372 = vsyncadd [#allocation4], 4294967264 }
 0x16f   :  { %235 = vsyncpa [#allocation3], 1 }
 0x170   :  { %236 = vsyncpa [#allocation6], 1 }
 0x171   :  { %237 = vsyncpa [#allocation4], 1 }

</bundles_post_ra>
